<compile_context>
chip_gen: v6e
topology: v6e:2x2x1
jax: 0.10.0
libtpu: 0.0.40
codegen_flags: <defaults>
</compile_context>

<pallas_src>
import jax
import jax.numpy as jnp
from jax.experimental import pallas as pl
from jax.experimental.pallas import tpu as pltpu


_LANE = 128
_SUBLANE = 8
_MIB = 1024 * 1024


def _round_up(v, m):
    return (v + m - 1) // m * m


def _vmem_capacity_bytes():
    try:
        return int(pltpu.get_tpu_info().vmem_capacity_bytes)
    except Exception:
        return 64 * _MIB  # conservative (v7x-sized) fallback


def conv2d_pallas(x, weight, bias, *, row_tile=None):
    """Cross-correlation of 2-D `x` with 2-D `weight`, plus scalar `bias[0]`."""
    H, W = x.shape
    kh, kw = weight.shape
    OH, OW = H - kh + 1, W - kw + 1

    # ---- lane / sublane padding ------------------------------------------------------
    Wp = _round_up(W, _LANE)
    need_halo = kh > 1
    halo_rows = _round_up(kh - 1, _SUBLANE) if need_halo else _SUBLANE

    # ---- generation-aware VMEM budget (drives tile size AND vmem_limit_bytes) --------
    vmem_phys = _vmem_capacity_bytes()
    vmem_limit = min(vmem_phys * 5 // 8, 96 * _MIB)      # ~40 MiB v7x, ~80 MiB v5e/v6e
    # Per-step working set ~ input tile (x2 buffers) + f32 output tile (x2 buffers)
    # + combined f32 scratch + a few f32 temporaries ~= 12 f32-tiles worth of rows.
    bytes_per_row = 12 * 4 * Wp
    max_rows = max(_SUBLANE,
                   (vmem_limit // 2) // bytes_per_row // _SUBLANE * _SUBLANE)
    # TODO(synk): for extremely wide planes (Wp ~ 1e5 lanes) even an 8-row tile exceeds
    # the budget; that would need lane-tiling of W, which this kernel does not implement.

    rows_needed = _round_up(H, halo_rows)
    if row_tile is None:
        row_tile = 1024 if vmem_phys >= 128 * _MIB else 512   # bigger tiles on 128-MiB parts
        # v7x has 2 TensorCores: ensure >=2 balanced "parallel" grid steps when possible.
        if rows_needed >= 2 * halo_rows:
            row_tile = min(row_tile, (rows_needed // 2) // halo_rows * halo_rows)
    row_tile = min(row_tile, max_rows, rows_needed)
    row_tile = max(halo_rows, row_tile // halo_rows * halo_rows)   # round DOWN, floor halo

    Hp = _round_up(max(H, row_tile), row_tile)
    num_tiles = Hp // row_tile

    # ---- host-side packing -----------------------------------------------------------
    xp = jnp.pad(x, ((0, Hp - H), (0, Wp - W)))        # storage dtype; upcast in-kernel
    w_flat = weight.reshape(-1).astype(jnp.float32)    # kernel taps as SMEM scalars
    b_flat = bias.reshape(-1).astype(jnp.float32)

    def kernel(w_ref, b_ref, x_ref, *rest):
        # Hoist all SMEM scalar reads; fold the bias into the accumulator init.
        taps = [w_ref[i] for i in range(kh * kw)]
        acc = jnp.full((row_tile, Wp), b_ref[0], jnp.float32)

        if need_halo:
            halo_ref, o_ref, comb_ref = rest
            # Build the combined (row_tile + halo_rows, Wp) buffer once per grid step;
            # every row-shifted tap is then a shifted vld instead of a concatenate.
            comb_ref[0:row_tile, :] = x_ref[...].astype(jnp.float32)
            comb_ref[row_tile:row_tile + halo_rows, :] = halo_ref[...].astype(jnp.float32)
            for a in range(kh):                         # row shift: shifted VMEM read
                xa = comb_ref[a:a + row_tile, :]
                for b in range(kw):                     # lane shift: XLU roll
                    # wrap-around columns land only in the cropped lane-pad region
                    xab = xa if b == 0 else pltpu.roll(xa, shift=Wp - b, axis=1)
                    acc = acc + xab * taps[a * kw + b]
        else:
            (o_ref,) = rest
            xv = x_ref[...].astype(jnp.float32)         # single hoisted load
            for b in range(kw):
                xab = xv if b == 0 else pltpu.roll(xv, shift=Wp - b, axis=1)
                acc = acc + xab * taps[b]

        # lane-dense (row_tile, Wp) store; wrapper crops to (OH, OW)
        o_ref[...] = acc.astype(o_ref.dtype)

    in_specs = [
        pl.BlockSpec(memory_space=pltpu.SMEM),           # flattened weight taps
        pl.BlockSpec(memory_space=pltpu.SMEM),           # bias
        pl.BlockSpec((row_tile, Wp), lambda i: (i, 0)),  # input row tile
    ]
    operands = [w_flat, b_flat, xp]
    scratch_shapes = []
    if need_halo:
        tiles_per_row_tile = row_tile // halo_rows
        last_halo_block = Hp // halo_rows - 1
        in_specs.append(                                  # (kh-1)-row halo from next tile
            pl.BlockSpec(
                (halo_rows, Wp),
                lambda i: (jnp.minimum((i + 1) * tiles_per_row_tile, last_halo_block), 0),
            )
        )
        operands.append(xp)
        scratch_shapes.append(pltpu.VMEM((row_tile + halo_rows, Wp), jnp.float32))

    cost = pl.CostEstimate(
        flops=2 * kh * kw * Hp * Wp,
        transcendentals=0,
        bytes_accessed=int(xp.size) * xp.dtype.itemsize * (2 if need_halo else 1)
        + Hp * Wp * 4,
    )

    out_padded = pl.pallas_call(
        kernel,
        out_shape=jax.ShapeDtypeStruct((Hp, Wp), jnp.float32),
        grid=(num_tiles,),
        in_specs=in_specs,
        out_specs=pl.BlockSpec((row_tile, Wp), lambda i: (i, 0)),
        scratch_shapes=scratch_shapes,
        compiler_params=pltpu.CompilerParams(
            dimension_semantics=("parallel",),            # row tiles shard across TCs
            vmem_limit_bytes=vmem_limit,
        ),
        cost_estimate=cost,
    )(*operands)

    return out_padded[:OH, :OW]


def conv2d_reference(x, weight, bias):
    """Pure-JAX reference mirroring the PyTorch cov2d loop (for verification)."""
    kh, kw = weight.shape
    OH, OW = x.shape[0] - kh + 1, x.shape[1] - kw + 1
    acc = jnp.zeros((OH, OW), jnp.float32)
    for a in range(kh):
        for b in range(kw):
            acc = acc + x[a:a + OH, b:b + OW].astype(jnp.float32) * weight[a, b]
    return acc + bias[0]


if __name__ == "__main__":
    key = jax.random.PRNGKey(0)
    k_w, k_x, k_w2, k_x2, k_w3, k_x3 = jax.random.split(key, 6)

    # Case 1: exactly the module/spec shapes — Conv2D(kernel_size=(1, 2)) on a 6x8 plane.
    weight = jax.random.uniform(k_w, (1, 2), dtype=jnp.float32)
    bias = jnp.zeros((1,), dtype=jnp.float32)
    x = jax.random.normal(k_x, (6, 8), dtype=jnp.float32)

    out = conv2d_pallas(x, weight, bias)
    jax.block_until_ready(out)
    ref = conv2d_reference(x, weight, bias)
    assert out.shape == (6, 7)
    assert jnp.allclose(out, ref, atol=1e-5, rtol=1e-5)

    # Case 2: exercises the halo + combined-scratch path with an explicit 8-row tile
    # (grid=3) and a nonzero bias folded into the accumulator init.
    weight2 = jax.random.uniform(k_w2, (3, 3), dtype=jnp.float32)
    bias2 = jnp.full((1,), 0.25, dtype=jnp.float32)
    x2 = jax.random.normal(k_x2, (20, 200), dtype=jnp.float32)

    out2 = conv2d_pallas(x2, weight2, bias2, row_tile=8)
    jax.block_until_ready(out2)
    ref2 = conv2d_reference(x2, weight2, bias2)
    assert out2.shape == (18, 198)
    assert jnp.allclose(out2, ref2, atol=1e-4, rtol=1e-4)

    # Case 3: default row_tile path — exercises the auto tile sizing and the >=2
    # parallel-step split (64 rows -> 2 tiles of 32) plus lane padding/cropping.
    weight3 = jax.random.uniform(k_w3, (2, 3), dtype=jnp.float32)
    x3 = jax.random.normal(k_x3, (64, 300), dtype=jnp.float32)

    out3 = conv2d_pallas(x3, weight3, bias2)
    jax.block_until_ready(out3)
    ref3 = conv2d_reference(x3, weight3, bias2)
    assert out3.shape == (63, 298)
    assert jnp.allclose(out3, ref3, atol=1e-4, rtol=1e-4)

    print("KERNEL_OK")
</pallas_src>

<mosaic_0001>
module attributes {stable_mosaic.version = 11 : i64} {
  func.func @kernel(%arg0: i32, %arg1: memref<2xf32, #tpu.memory_space<smem>>, %arg2: memref<1xf32, #tpu.memory_space<smem>>, %arg3: memref<8x128xf32, #tpu.memory_space<vmem>>, %arg4: memref<8x128xf32, #tpu.memory_space<vmem>>) attributes {dimension_semantics = [#tpu.dimension_semantics<parallel>], iteration_bounds = array<i64: 1>, scalar_prefetch = 0 : i64, scratch_operands = 0 : i64, tpu.core_type = #tpu.core_type<tc>, window_params = [{transform_indices = @transform_0, window_bounds = array<i64: 2>}, {transform_indices = @transform_1, window_bounds = array<i64: 1>}, {transform_indices = @transform_2, window_bounds = array<i64: 8, 128>}, {transform_indices = @transform_3, window_bounds = array<i64: 8, 128>}]} {
    %c0 = arith.constant 0 : index
    %0 = memref.load %arg1[%c0] : memref<2xf32, #tpu.memory_space<smem>>
    %c1 = arith.constant 1 : index
    %1 = memref.load %arg1[%c1] : memref<2xf32, #tpu.memory_space<smem>>
    %c0_0 = arith.constant 0 : index
    %2 = memref.load %arg2[%c0_0] : memref<1xf32, #tpu.memory_space<smem>>
    %3 = vector.broadcast %2 : f32 to vector<8x128xf32>
    %c0_1 = arith.constant 0 : index
    %c0_2 = arith.constant 0 : index
    %4 = vector.load %arg3[%c0_1, %c0_2] : memref<8x128xf32, #tpu.memory_space<vmem>>, vector<8x128xf32>
    %5 = vector.broadcast %0 : f32 to vector<8x128xf32>
    %6 = arith.mulf %4, %5 : vector<8x128xf32>
    %7 = arith.addf %3, %6 : vector<8x128xf32>
    %c127_i32 = arith.constant 127 : i32
    %8 = tpu.dynamic_rotate %4 by %c127_i32 dim 1 : vector<8x128xf32>, i32 -> vector<8x128xf32>
    %9 = vector.broadcast %1 : f32 to vector<8x128xf32>
    %10 = arith.mulf %8, %9 : vector<8x128xf32>
    %11 = arith.addf %7, %10 : vector<8x128xf32>
    %c0_3 = arith.constant 0 : index
    %c0_4 = arith.constant 0 : index
    %12 = vector.load %arg4[%c0_3, %c0_4] : memref<8x128xf32, #tpu.memory_space<vmem>>, vector<8x128xf32>
    tpu.vector_store %arg4[%c0_3, %c0_4], %11 {strides = array<i32>} : memref<8x128xf32, #tpu.memory_space<vmem>>, vector<8x128xf32>,
    return
  }
  func.func @transform_0(%arg0: i32) -> i32 {
    %c0_i32 = arith.constant 0 : i32
    %c0_i32_0 = arith.constant 0 : i32
    return %c0_i32 : i32
  }
  func.func @transform_1(%arg0: i32) -> i32 {
    %c0_i32 = arith.constant 0 : i32
    %c0_i32_0 = arith.constant 0 : i32
    return %c0_i32 : i32
  }
  func.func @transform_2(%arg0: i32) -> (i32, i32) {
    %c0_i32 = arith.constant 0 : i32
    %c0_i32_0 = arith.constant 0 : i32
    return %arg0, %c0_i32 : i32, i32
  }
  func.func @transform_3(%arg0: i32) -> (i32, i32) {
    %c0_i32 = arith.constant 0 : i32
    %c0_i32_0 = arith.constant 0 : i32
    return %arg0, %c0_i32 : i32, i32
  }
}

</mosaic_0001>

<bundles_post_ra>
// kernel: tpu_custom_call.1
= control target key start
LH: loop header
LB: loop body
LE: loop exit
PB: predicated region body
PF: predicated region fallthrough
CT: control target
= control target key end

     0   :  { %9 = vsyncpa [#allocation6], 0  ;;  %s170_s0 = inlined_call_operand.vmem [shape: f32[2], index: 0, kind: input, shape index: {}]   ;;  %s171_s1 = inlined_call_operand.<no memory space> [shape: f32[1], index: 1, kind: input, shape index: {}]   ;;  %s172_s2 = inlined_call_operand.hbm [shape: f32[8,128], index: 2, kind: input, shape index: {}]   ;;  %s173_s3 = inlined_call_operand.hbm [shape: f32[8,128], index: 3, kind: output, shape index: {}]  }
   0x1   :  { %10 = vsyncpa [#allocation4], 0 }
   0x2   :  { %11 = vsyncpa [#allocation5], 0  ;;  %s18_s14 = sshll.u32 %s170_s0, 4  ;;  %s19_s14 = int_to_ptr.vmem [resolvable:$true] %s18_s14 }
   0x3   :  { %s76_s15 = scalar_lea.vmem %s19_s14, 16  ;;  %p81_p1 = scmp.lt.s32.totalorder %s19_s14, %s19_s14 }
   0x4   :  { %p77_p0 = scmp.ne.s32.totalorder %s19_s14, %s76_s15  ;;  %p82_p2 = scmp.lt.s32.totalorder %s76_s15, %s76_s15 }
   0x6   :  { %p83_p3 = por %p82_p2, %p81_p1 }
   0x8   :  { %p84_p4 = pnand %p83_p3, %p77_p0 }
   0xa   :  { %87 = shalt.err (!%p84_p4)
}
   0xb   :  { %s134_s16 = smov [#allocation3]   ;;  %s135_s17 = smov [#allocation7]  }
   0xc   :  { %21 = dma.vmem_to_smem %s19_s14, 16, %s134_s16, [#allocation6]  }
   0xd   :  { %s30_s18 = sshll.u32 %s135_s17, 4  ;;  %s31_s18 = int_to_ptr.vmem [resolvable:$true] %s30_s18 }
   0xe   :  { %s96_s19 = scalar_lea.vmem %s31_s18, 128  ;;  %p101_p6 = scmp.lt.s32.totalorder %s31_s18, %s31_s18 }
   0xf   :  { %p97_p5 = scmp.ne.s32.totalorder %s31_s18, %s96_s19  ;;  %p102_p7 = scmp.lt.s32.totalorder %s96_s19, %s96_s19 }
  0x11   :  { %p103_p8 = por %p102_p7, %p101_p6 }
  0x13   :  { %p104_p9 = pnand %p103_p8, %p97_p5 }
  0x15   :  { %107 = shalt.err (!%p104_p9)
}
  0x16   :  { %33 = dma.hbm_to_vmem [thread:$0]  %s172_s2, 128, %s31_s18, [#allocation4]  }
  0x17   :  { %128 = dma.done.wait [#allocation6], 16  }
  0x18   :  { %129 = vsyncadd [#allocation6], 4294967280 }
  0x19   :  { %130 = dma.done.wait [#allocation4], 128  }
  0x1a   :  { %131 = vsyncadd [#allocation4], 4294967168 }
  0x1b   :  { %40 = sfence }
  0x1c   :  { %v45_v0 = vld [vmem:[#allocation7] sm:$0xff]  ;;  %s136_s21 = smov 127   ;;  %s41_s22 = sld [smem:[#allocation3]]  ;;  %v44_v3 = vstv %s171_s1 }
  0x1d   :  { %49 = vrot.lane.b32.xlu0 %v45_v0, %s136_s21  ;;  %s71_s23 = sld [smem:[#allocation3 + $0x1]]  ;;  %s137_s2 = smov [#allocation8]  }
  0x1e   :  { %s61_s26 = sshll.u32 %s137_s2, 4  ;;  %s62_s26 = int_to_ptr.vmem [resolvable:$true] %s61_s26 }
  0x1f   :  { %s108_s27 = scalar_lea.vmem %s62_s26, 128  ;;  %p113_p11 = scmp.lt.s32.totalorder %s62_s26, %s62_s26 }
  0x20   :  { %p109_p10 = scmp.ne.s32.totalorder %s62_s26, %s108_s27  ;;  %p114_p12 = scmp.lt.s32.totalorder %s108_s27, %s108_s27 }
  0x22   :  { %v46_v1 = vstv %s41_s22  ;;  %p115_p13 = por %p114_p12, %p113_p11 }
  0x23   :  { %v47_v2 = vmul.f32 %v46_v1, %v45_v0  ;;  %v51_v4 = vstv %s71_s23 }
  0x24   :  { %p116_p0 = pnand %p115_p13, %p109_p10 }
  0x25   :  { %v48_v5 = vadd.f32 %v47_v2, %v44_v3 }
  0x8f   :  { %v50_v6 = vpop.permute.xlu0 %49 }
  0x90   :  { %v52_v7 = vmul.f32 %v51_v4, %v50_v6 }
  0x92   :  { %v53_v8 = vadd.f32 %v52_v7, %v48_v5 }
  0x94   :  { %54 = vst [vmem:[#allocation8] sm:$0xff] %v53_v8 }
  0x95   :  { %119 = shalt.err (!%p116_p0)
}
  0x96   :  { %64 = dma.vmem_to_hbm [thread:$0]  %s62_s26, 128, %s173_s3, [#allocation5]  }
  0x97   :  { %132 = dma.done.wait [#allocation5], 128  }
  0x98   :  { %133 = vsyncadd [#allocation5], 4294967168 }
  0x99   :  { %68 = vsyncpa [#allocation4], 1 }
  0x9a   :  { %69 = vsyncpa [#allocation5], 1 }
  0x9b   :  { %70 = vsyncpa [#allocation6], 1 }

</bundles_post_ra>
